<compile_context>
chip_gen: v6e
topology: v6e:2x2x1
jax: 0.10.0
libtpu: 0.0.40
codegen_flags: <defaults>
</compile_context>

<pallas_src>
import functools

import jax
import jax.numpy as jnp
from jax.experimental import pallas as pl
from jax.experimental.pallas import tpu as pltpu

LANES = 128          # vreg lane width
BLOCK_ROWS = 2048    # rows per grid step -> 1 MiB f32 per input block
MAX_CORES = 2        # leading "parallel" grid axis (v7x megacore; harmless on 1-TC chips)


def _smape_kernel(o_ref, t_ref, acc_ref, *, eps, block_rows, steps,
                  valid_rows, needs_mask):
    """One grid step: accumulate lane-wise partial SMAPE sums into acc_ref.

    acc_ref is this core's (8, 128) output block, revisited across the
    reduction axis (grid axis 1); the final scalar reduce is done in the
    wrapper.
    """
    s = pl.program_id(1)

    @pl.when(s == 0)
    def _():
        acc_ref[...] = jnp.zeros_like(acc_ref)

    o = o_ref[...].astype(jnp.float32)
    t = t_ref[...].astype(jnp.float32)
    term = jnp.abs(o - t) / (jnp.abs(o) + jnp.abs(t) + eps)
    # TODO(synk): pl.reciprocal(denom, approx=True) would move the divide onto
    # the EUP, but its error exceeds the 1e-5 tolerance vs. the torch reference,
    # and the kernel is HBM-bound anyway; kept exact.

    if needs_mask:
        # Zero rows past the real data (partial / fully out-of-range blocks).
        blk = pl.program_id(0) * steps + s
        row_ids = blk * block_rows + jax.lax.broadcasted_iota(
            jnp.int32, (block_rows, LANES), 0)
        term = jnp.where(row_ids < valid_rows, term, 0.0)

    # Pure VPU adds: fold (block_rows, 128) down onto the (8, 128) accumulator.
    acc_ref[...] += term.reshape(-1, 8, LANES).sum(axis=0)


def _smape_partial_sums(o2d, t2d, *, eps, rows, block_rows, num_cores, steps):
    nblocks = pl.cdiv(rows, block_rows)
    needs_mask = (num_cores * steps * block_rows) != rows

    def in_index_map(p, s):
        b = p * steps + s
        if needs_mask:
            b = jnp.minimum(b, nblocks - 1)  # keep DMAs in bounds for padded blocks
        return (b, 0)

    kernel = functools.partial(
        _smape_kernel, eps=float(eps), block_rows=block_rows, steps=steps,
        valid_rows=rows, needs_mask=needs_mask)

    return pl.pallas_call(
        kernel,
        out_shape=jax.ShapeDtypeStruct((num_cores, 8, LANES), jnp.float32),
        grid_spec=pltpu.PrefetchScalarGridSpec(
            num_scalar_prefetch=0,
            grid=(num_cores, steps),
            in_specs=[
                pl.BlockSpec((block_rows, LANES), in_index_map),
                pl.BlockSpec((block_rows, LANES), in_index_map),
            ],
            out_specs=pl.BlockSpec((None, 8, LANES), lambda p, s: (p, 0, 0)),
        ),
        compiler_params=pltpu.CompilerParams(
            dimension_semantics=("parallel", "arbitrary")),
    )(o2d, t2d)


def smape_loss(outputs, targets, eps=0.01):
    assert outputs.shape == targets.shape
    n = int(outputs.size)
    if n == 0:
        return jnp.float32(jnp.nan)  # matches torch.mean of an empty tensor

    o_flat = outputs.reshape(-1)
    t_flat = targets.reshape(-1)

    n_main = (n // LANES) * LANES
    rows = n_main // LANES

    total = jnp.zeros((), jnp.float32)
    handled = 0

    if rows >= 8:  # enough data to be worth a kernel launch
        block_rows = min(BLOCK_ROWS, (rows // 8) * 8)
        nblocks = pl.cdiv(rows, block_rows)
        num_cores = min(MAX_CORES, nblocks)
        steps = pl.cdiv(nblocks, num_cores)

        # When n is already lane-aligned the slice is the identity (no copy)
        # and the reshape is a bitcast.
        o2d = o_flat[:n_main].reshape(rows, LANES)
        t2d = t_flat[:n_main].reshape(rows, LANES)

        partials = _smape_partial_sums(
            o2d, t2d, eps=eps, rows=rows, block_rows=block_rows,
            num_cores=num_cores, steps=steps)
        total = total + jnp.sum(partials)
        handled = n_main

    if handled < n:
        # Ragged remainder (< 128 elements): plain JAX, negligible cost.
        o_tail = o_flat[handled:].astype(jnp.float32)
        t_tail = t_flat[handled:].astype(jnp.float32)
        total = total + jnp.sum(
            jnp.abs(o_tail - t_tail)
            / (jnp.abs(o_tail) + jnp.abs(t_tail) + eps))

    return total / n


def smape_ref(outputs, targets, eps=0.01):
    o = outputs.astype(jnp.float32)
    t = targets.astype(jnp.float32)
    return jnp.mean(jnp.abs(o - t) / (jnp.abs(o) + jnp.abs(t) + eps))


if __name__ == "__main__":
    key = jax.random.PRNGKey(0)
    eps = 0.01

    # Shapes: primary NCHW case, a ragged case (exercises in-kernel masking +
    # the JAX tail), and a multi-block case (exercises the 2-way core split,
    # partial last block and the clamped out-of-range block).
    cases = [
        ((2, 4, 16, 16), jnp.float32),
        ((2, 3, 17, 19), jnp.float32),
        ((2, 8, 128, 160), jnp.float32),
        ((2, 4, 16, 16), jnp.bfloat16),   # native-dtype (half HBM traffic) path
    ]

    first_loss = None
    for shape, dtype in cases:
        key, k1, k2 = jax.random.split(key, 3)
        outputs = jax.random.normal(k1, shape, dtype=jnp.float32).astype(dtype)
        targets = jax.random.normal(k2, shape, dtype=jnp.float32).astype(dtype)

        loss = smape_loss(outputs, targets, eps=eps)
        jax.block_until_ready(loss)
        if first_loss is None:
            first_loss = loss

        ref = smape_ref(outputs, targets, eps=eps)
        assert jnp.allclose(loss, ref, rtol=1e-5, atol=1e-6), (shape, dtype, loss, ref)

    jax.block_until_ready(first_loss)
    print("KERNEL_OK")
</pallas_src>

<mosaic_0001>
module attributes {stable_mosaic.version = 11 : i64} {
  func.func @_smape_kernel(%arg0: i32, %arg1: i32, %arg2: memref<16x128xf32, #tpu.memory_space<vmem>>, %arg3: memref<16x128xf32, #tpu.memory_space<vmem>>, %arg4: memref<1x8x128xf32, #tpu.memory_space<vmem>>) attributes {dimension_semantics = [#tpu.dimension_semantics<parallel>, #tpu.dimension_semantics<arbitrary>], iteration_bounds = array<i64: 1, 1>, scalar_prefetch = 0 : i64, scratch_operands = 0 : i64, tpu.core_type = #tpu.core_type<tc>, window_params = [{transform_indices = @transform_0, window_bounds = array<i64: 16, 128>}, {transform_indices = @transform_1, window_bounds = array<i64: 16, 128>}, {transform_indices = @transform_2, window_bounds = array<i64: 1, 8, 128>}]} {
    %c0_i32 = arith.constant 0 : i32
    %0 = arith.cmpi eq, %arg1, %c0_i32 : i32
    %1 = arith.extui %0 : i1 to i32
    %c0_i32_0 = arith.constant 0 : i32
    %2 = arith.cmpi ne, %1, %c0_i32_0 : i32
    scf.if %2 {
      %cst_11 = arith.constant 0.000000e+00 : f32
      %21 = vector.broadcast %cst_11 : f32 to vector<8x128xf32>
      %c0_12 = arith.constant 0 : index
      %c0_13 = arith.constant 0 : index
      %c0_14 = arith.constant 0 : index
      %22 = vector.load %arg4[%c0_12, %c0_13, %c0_14] : memref<1x8x128xf32, #tpu.memory_space<vmem>>, vector<1x8x128xf32>
      %23 = vector.shape_cast %22 : vector<1x8x128xf32> to vector<8x128xf32>
      %24 = vector.shape_cast %21 : vector<8x128xf32> to vector<1x8x128xf32>
      tpu.vector_store %arg4[%c0_12, %c0_13, %c0_14], %24 {strides = array<i32>} : memref<1x8x128xf32, #tpu.memory_space<vmem>>, vector<1x8x128xf32>,
    } else {
    }
    %c0 = arith.constant 0 : index
    %c0_1 = arith.constant 0 : index
    %3 = vector.load %arg2[%c0, %c0_1] : memref<16x128xf32, #tpu.memory_space<vmem>>, vector<16x128xf32>
    %c0_2 = arith.constant 0 : index
    %c0_3 = arith.constant 0 : index
    %4 = vector.load %arg3[%c0_2, %c0_3] : memref<16x128xf32, #tpu.memory_space<vmem>>, vector<16x128xf32>
    %5 = arith.subf %3, %4 : vector<16x128xf32>
    %6 = math.absf %5 : vector<16x128xf32>
    %7 = math.absf %3 : vector<16x128xf32>
    %8 = math.absf %4 : vector<16x128xf32>
    %9 = arith.addf %7, %8 : vector<16x128xf32>
    %cst = arith.constant 0.00999999977 : f32
    %10 = vector.broadcast %cst : f32 to vector<16x128xf32>
    %11 = arith.addf %9, %10 : vector<16x128xf32>
    %12 = arith.divf %6, %11 : vector<16x128xf32>
    %c0_4 = arith.constant 0 : index
    %c0_5 = arith.constant 0 : index
    %c0_6 = arith.constant 0 : index
    %13 = vector.load %arg4[%c0_4, %c0_5, %c0_6] : memref<1x8x128xf32, #tpu.memory_space<vmem>>, vector<1x8x128xf32>
    %14 = vector.shape_cast %13 : vector<1x8x128xf32> to vector<8x128xf32>
    %15 = vector.shape_cast %12 : vector<16x128xf32> to vector<2x8x128xf32>
    %cst_7 = arith.constant dense<0.000000e+00> : vector<8x128xf32>
    %16 = vector.multi_reduction <add>, %15, %cst_7 [0] : vector<2x8x128xf32> to vector<8x128xf32>
    %17 = arith.addf %14, %16 : vector<8x128xf32>
    %c0_8 = arith.constant 0 : index
    %c0_9 = arith.constant 0 : index
    %c0_10 = arith.constant 0 : index
    %18 = vector.load %arg4[%c0_8, %c0_9, %c0_10] : memref<1x8x128xf32, #tpu.memory_space<vmem>>, vector<1x8x128xf32>
    %19 = vector.shape_cast %18 : vector<1x8x128xf32> to vector<8x128xf32>
    %20 = vector.shape_cast %17 : vector<8x128xf32> to vector<1x8x128xf32>
    tpu.vector_store %arg4[%c0_8, %c0_9, %c0_10], %20 {strides = array<i32>} : memref<1x8x128xf32, #tpu.memory_space<vmem>>, vector<1x8x128xf32>,
    return
  }
  func.func @transform_0(%arg0: i32, %arg1: i32) -> (i32, i32) {
    %c1_i32 = arith.constant 1 : i32
    %0 = arith.muli %arg0, %c1_i32 : i32
    %1 = arith.addi %0, %arg1 : i32
    %c0_i32 = arith.constant 0 : i32
    %c0_i32_0 = arith.constant 0 : i32
    return %1, %c0_i32 : i32, i32
  }
  func.func @transform_1(%arg0: i32, %arg1: i32) -> (i32, i32) {
    %c1_i32 = arith.constant 1 : i32
    %0 = arith.muli %arg0, %c1_i32 : i32
    %1 = arith.addi %0, %arg1 : i32
    %c0_i32 = arith.constant 0 : i32
    %c0_i32_0 = arith.constant 0 : i32
    return %1, %c0_i32 : i32, i32
  }
  func.func @transform_2(%arg0: i32, %arg1: i32) -> (i32, i32, i32) {
    %c0_i32 = arith.constant 0 : i32
    %c0_i32_0 = arith.constant 0 : i32
    %c0_i32_1 = arith.constant 0 : i32
    return %arg0, %c0_i32, %c0_i32_0 : i32, i32, i32
  }
}

</mosaic_0001>

<bundles_post_ra>
// kernel: tpu_custom_call.1
= control target key start
LH: loop header
LB: loop body
LE: loop exit
PB: predicated region body
PF: predicated region fallthrough
CT: control target
= control target key end

     0   :  { %7 = vsyncpa [#allocation3], 0  ;;  %s202_s0 = inlined_call_operand.hbm [shape: f32[16,128], index: 0, kind: input, shape index: {}]   ;;  %s203_s1 = inlined_call_operand.hbm [shape: f32[16,128], index: 1, kind: input, shape index: {}]   ;;  %s204_s2 = inlined_call_operand.hbm [shape: f32[1,8,128], index: 2, kind: output, shape index: {}]  }
   0x1   :  { %8 = vsyncpa [#allocation6], 0 }
   0x2   :  { %9 = vsyncpa [#allocation4], 0  ;;  %s173_s9 = smov [#allocation2]  }
   0x3   :  { %s19_s10 = sshll.u32 %s173_s9, 4  ;;  %s20_s10 = int_to_ptr.vmem [resolvable:$true] %s19_s10 }
   0x4   :  { %s115_s11 = scalar_lea.vmem %s20_s10, 256  ;;  %p120_p1 = scmp.lt.s32.totalorder %s20_s10, %s20_s10 }
   0x5   :  { %p116_p0 = scmp.ne.s32.totalorder %s20_s10, %s115_s11  ;;  %p121_p2 = scmp.lt.s32.totalorder %s115_s11, %s115_s11 }
   0x7   :  { %p122_p3 = por %p121_p2, %p120_p1 }
   0x9   :  { %p123_p4 = pnand %p122_p3, %p116_p0 }
   0xb   :  { %126 = shalt.err (!%p123_p4)
}
   0xc   :  { %s174_s12 = smov 128   ;;  %s175_s13 = smov 8  }
   0xd   :  { %25 = dma.hbm_to_vmem [thread:$0]  %s202_s0, 256, %s20_s10, [#allocation3], %s174_s12, %s174_s12, %s175_s13  }
   0xe   :  { %s176_s16 = smov [#allocation5]  }
   0xf   :  { %s35_s17 = sshll.u32 %s176_s16, 4  ;;  %s36_s17 = int_to_ptr.vmem [resolvable:$true] %s35_s17 }
  0x10   :  { %s135_s18 = scalar_lea.vmem %s36_s17, 256  ;;  %p140_p6 = scmp.lt.s32.totalorder %s36_s17, %s36_s17 }
  0x11   :  { %p136_p5 = scmp.ne.s32.totalorder %s36_s17, %s135_s18  ;;  %p141_p7 = scmp.lt.s32.totalorder %s135_s18, %s135_s18 }
  0x13   :  { %p142_p8 = por %p141_p7, %p140_p6 }
  0x15   :  { %p143_p9 = pnand %p142_p8, %p136_p5 }
  0x17   :  { %146 = shalt.err (!%p143_p9)
}
  0x18   :  { %41 = dma.hbm_to_vmem [thread:$0]  %s203_s1, 256, %s36_s17, [#allocation6], %s174_s12, %s174_s12, %s175_s13  }
  0x19   :  { %167 = dma.done.wait [#allocation3], 256  }
  0x1a   :  { %168 = vsyncadd [#allocation3], 4294967040 }
  0x1b   :  { %169 = dma.done.wait [#allocation6], 256  }
  0x1c   :  { %170 = vsyncadd [#allocation6], 4294967040  ;;  %v57_v0 = vld [vmem:[#allocation2] sm:$0xff]  ;;  %v58_v1 = vld [vmem:[#allocation2 + $0x8] sm:$0xff]  ;;  %s177_s0 = smov [#allocation7]  }
  0x1d   :  { %v59_v2 = vld [vmem:[#allocation5] sm:$0xff]  ;;  %v60_v3 = vld [vmem:[#allocation5 + $0x8] sm:$0xff]  ;;  %v65_v4 = vand.u32 2147483647, %v57_v0  ;;  %v66_v5 = vand.u32 2147483647, %v58_v1 }
  0x1e   :  { %v67_v6 = vand.u32 2147483647, %v59_v2  ;;  %v68_v7 = vand.u32 2147483647, %v60_v3  ;;  %v61_v12 = vsub.f32 %v57_v0, %v59_v2  ;;  %v62_v13 = vsub.f32 %v58_v1, %v60_v3  ;;  %s87_s1 = sshll.u32 %s177_s0, 4  ;;  %s88_s1 = int_to_ptr.vmem [resolvable:$true] %s87_s1 }
  0x1f   :  { %s147_s21 = scalar_lea.vmem %s88_s1, 128  ;;  %p152_p11 = scmp.lt.s32.totalorder %s88_s1, %s88_s1 }
  0x20   :  { %v69_v8 = vadd.f32 %v67_v6, %v65_v4  ;;  %v70_v9 = vadd.f32 %v68_v7, %v66_v5  ;;  %v63_v14 = vand.u32 2147483647, %v61_v12  ;;  %v64_v15 = vand.u32 2147483647, %v62_v13  ;;  %p148_p10 = scmp.ne.s32.totalorder %s88_s1, %s147_s21  ;;  %p153_p12 = scmp.lt.s32.totalorder %s147_s21, %s147_s21 }
  0x22   :  { %v71_v10 = vadd.f32 0.01, %v69_v8  ;;  %v72_v11 = vadd.f32 0.01, %v70_v9  ;;  %p154_p13 = por %p153_p12, %p152_p11 }
  0x24   :  { %103 = vrcp.f32 %v71_v10  ;;  %p155_p0 = pnand %p154_p13, %p148_p10 }
  0x25   :  { %105 = vrcp.f32 %v72_v11 }
  0x31   :  { %v104_v16 = vpop.eup %103 }
  0x32   :  { %v106_v17 = vpop.eup %105  ;;  %v74_v18 = vmul.f32 %v104_v16, %v63_v14 }
  0x33   :  { %v76_v19 = vmul.f32 %v106_v17, %v64_v15 }
  0x35   :  { %v78_v20 = vadd.f32 %v76_v19, %v74_v18 }
  0x37   :  { %80 = vst [vmem:[#allocation7] sm:$0xff] %v78_v20 }
  0x38   :  { %158 = shalt.err (!%p155_p0)
}
  0x39   :  { %90 = dma.vmem_to_hbm [thread:$0]  %s88_s1, 128, %s204_s2, [#allocation4]  }
  0x3a   :  { %171 = dma.done.wait [#allocation4], 128  }
  0x3b   :  { %172 = vsyncadd [#allocation4], 4294967168 }
  0x3c   :  { %94 = vsyncpa [#allocation3], 1 }
  0x3d   :  { %95 = vsyncpa [#allocation6], 1 }
  0x3e   :  { %96 = vsyncpa [#allocation4], 1 }

</bundles_post_ra>
